<compile_context>
chip_gen: v6e
topology: v6e:2x2x1
jax: 0.10.0
libtpu: 0.0.40
codegen_flags: <defaults>
</compile_context>

<pallas_src>
import jax
import jax.numpy as jnp
from jax.experimental import pallas as pl
from jax.experimental.pallas import tpu as pltpu


# Widest-first lane candidates; all multiples of 128, so every block is a
# full-lane-width contiguous slab in HBM (only block BYTES matter for DMA).
_LANE_CANDIDATES = (1024, 512, 256, 128)


def _round_up(v, m):
    return -(-v // m) * m


def _block_budget():
    """Per-generation target block bytes and optional scoped-VMEM override.

    The kernel only needs block size to amortize the fixed ~0.35 us grid-step
    overhead against per-block DMA time (which scales with HBM bandwidth):
      v5e (~0.82 TB/s): 2 MiB blocks  (fits 16 MiB default scoped VMEM)
      v6e (~1.4  TB/s): 4 MiB blocks  (4 x 4 MiB = 16 MiB < 32 MiB default)
      v7x (~3.2  TB/s): 8 MiB blocks  (raise limit; 4 x 8 = 32 MiB < 64 MiB phys)
    """
    try:
        kind = jax.devices()[0].device_kind.lower()
    except Exception:  # defensive: fall through to a safe default
        kind = ""
    if "v5 lite" in kind or "v5e" in kind or "v5lite" in kind:
        return 2 << 20, None
    if "v6" in kind:
        return 4 << 20, None
    if "v7" in kind or "7x" in kind:
        return 8 << 20, 48 << 20
    # Unknown chip: middle-of-the-road block, explicit limit so 4 x 4 MiB
    # double-buffers always fit.
    return 4 << 20, 32 << 20


def _compiler_params(vmem_limit):
    kwargs = dict(
        # "parallel" lets Mosaic shard the row grid across both v7x
        # TensorCores; harmless no-op on single-TC v5e/v6e.
        # TODO(synk): confirm on xprof that both v7x TCs stream; if only one is
        # busy, switch this axis to pltpu.CORE_PARALLEL.
        dimension_semantics=("parallel",),
    )
    if vmem_limit is not None:
        kwargs["vmem_limit_bytes"] = vmem_limit
    return pltpu.CompilerParams(**kwargs)


def _elementwise_kernel(x_ref, o_ref):
    # (x + 2) * (x - 3) / (x + 1) ** 2.  Computed in f32: the kernel is
    # memory-bound so the upcast and divide are fully hidden in VPU slack.
    # NOTE: x == -1 yields inf/nan exactly like the reference expression.
    x = x_ref[...].astype(jnp.float32)
    num = (x + 2.0) * (x - 3.0)
    den = (x + 1.0) * (x + 1.0)
    o_ref[...] = (num / den).astype(o_ref.dtype)


@jax.jit
def pt_module_forward(x):
    """Pallas implementation of PtModule.forward: (x+2)*(x-3)/(x+1)**2."""
    orig_shape = x.shape
    n = x.size
    itemsize = jnp.dtype(x.dtype).itemsize
    target_bytes, vmem_limit = _block_budget()
    params = _compiler_params(vmem_limit)
    flat = x.reshape(-1)

    # ---- main path: n divisible by 128 -> lane-dense 2-D slab -------------
    lanes = next((c for c in _LANE_CANDIDATES if n % c == 0), None)
    if lanes is not None:
        rows = n // lanes
        x2d = flat.reshape(rows, lanes)

        # Size the row tile by block BYTES, rounded down to the 8-sublane
        # granule (full lane width is already guaranteed by `lanes`).
        max_tile_r = max(8, (target_bytes // (lanes * itemsize)) // 8 * 8)
        if rows <= max_tile_r:
            tile_r = rows  # single full-array block (full dim is always legal)
        else:
            # Balance blocks so the trailing one is not nearly empty
            # (e.g. 576 rows -> 2 x 288 instead of 512 + 64).
            n_blocks = pl.cdiv(rows, max_tile_r)
            tile_r = min(max_tile_r, _round_up(pl.cdiv(rows, n_blocks), 8))
        grid = (pl.cdiv(rows, tile_r),)

        out2d = pl.pallas_call(
            _elementwise_kernel,
            out_shape=jax.ShapeDtypeStruct((rows, lanes), x.dtype),
            grid_spec=pl.GridSpec(
                grid=grid,
                in_specs=[pl.BlockSpec((tile_r, lanes), lambda i: (i, 0))],
                out_specs=pl.BlockSpec((tile_r, lanes), lambda i: (i, 0)),
            ),
            compiler_params=params,
        )(x2d)
        return out2d.reshape(orig_shape)

    # ---- ragged path: n % 128 != 0 -----------------------------------------
    # No jnp.pad / out[:n] slice (those cost ~2 extra full HBM passes on a
    # bandwidth-bound op).  Run a 1-D grid over the flat array with blocks
    # that are a multiple of 1024 (= 8 x 128); Pallas masks the partial last
    # block, so out-of-bounds tail values are computed on garbage but never
    # written back.
    max_tile_e = max(1024, (target_bytes // itemsize) // 1024 * 1024)
    if n <= max_tile_e:
        tile_e = n  # single block equal to the full (ragged) array dim
    else:
        n_blocks = pl.cdiv(n, max_tile_e)
        tile_e = min(max_tile_e, _round_up(pl.cdiv(n, n_blocks), 1024))
    grid = (pl.cdiv(n, tile_e),)

    out_flat = pl.pallas_call(
        _elementwise_kernel,
        out_shape=jax.ShapeDtypeStruct((n,), x.dtype),
        grid_spec=pl.GridSpec(
            grid=grid,
            in_specs=[pl.BlockSpec((tile_e,), lambda i: (i,))],
            out_specs=pl.BlockSpec((tile_e,), lambda i: (i,)),
        ),
        compiler_params=params,
    )(flat)
    return out_flat.reshape(orig_shape)


if __name__ == "__main__":
    def ref_fn(v):
        return (v + 2.0) * (v - 3.0) / (v + 1.0) ** 2

    key = jax.random.PRNGKey(0)
    k1, k2, k3 = jax.random.split(key, 3)

    # Small NCHW-style input (2-D slab path, single block).
    x = jax.random.normal(k1, (2, 4, 16, 16), dtype=jnp.float32)
    out = pt_module_forward(x)
    jax.block_until_ready(out)
    assert out.shape == x.shape
    assert jnp.allclose(out, ref_fn(x), rtol=1e-5, atol=1e-5)

    # Medium input exercising the multi-block / balanced-trailing-block path
    # (1152 rows at lanes=1024 on v5e/v6e block budgets).
    x2 = jax.random.normal(k2, (4, 8, 128, 288), dtype=jnp.float32)
    out2 = pt_module_forward(x2)
    jax.block_until_ready(out2)
    assert out2.shape == x2.shape
    assert jnp.allclose(out2, ref_fn(x2), rtol=1e-5, atol=1e-5)

    # Ragged size (n % 128 != 0) exercising the masked 1-D path
    # (no pad / slice HBM passes).
    x3 = jax.random.normal(k3, (3, 5, 7, 11), dtype=jnp.float32)
    out3 = pt_module_forward(x3)
    jax.block_until_ready(out3)
    assert out3.shape == x3.shape
    assert jnp.allclose(out3, ref_fn(x3), rtol=1e-5, atol=1e-5)

    print("KERNEL_OK")
</pallas_src>

<mosaic_0001>
module attributes {stable_mosaic.version = 11 : i64} {
  func.func @_elementwise_kernel(%arg0: i32, %arg1: memref<2x1024xf32, #tpu.memory_space<vmem>>, %arg2: memref<2x1024xf32, #tpu.memory_space<vmem>>) attributes {dimension_semantics = [#tpu.dimension_semantics<parallel>], iteration_bounds = array<i64: 1>, scalar_prefetch = 0 : i64, scratch_operands = 0 : i64, tpu.core_type = #tpu.core_type<tc>, window_params = [{transform_indices = @transform_0, window_bounds = array<i64: 2, 1024>}, {transform_indices = @transform_1, window_bounds = array<i64: 2, 1024>}]} {
    %c0 = arith.constant 0 : index
    %c0_0 = arith.constant 0 : index
    %0 = vector.load %arg1[%c0, %c0_0] : memref<2x1024xf32, #tpu.memory_space<vmem>>, vector<2x1024xf32>
    %cst = arith.constant 2.000000e+00 : f32
    %1 = vector.broadcast %cst : f32 to vector<2x1024xf32>
    %2 = arith.addf %0, %1 : vector<2x1024xf32>
    %cst_1 = arith.constant 3.000000e+00 : f32
    %3 = vector.broadcast %cst_1 : f32 to vector<2x1024xf32>
    %4 = arith.subf %0, %3 : vector<2x1024xf32>
    %5 = arith.mulf %2, %4 : vector<2x1024xf32>
    %cst_2 = arith.constant 1.000000e+00 : f32
    %6 = vector.broadcast %cst_2 : f32 to vector<2x1024xf32>
    %7 = arith.addf %0, %6 : vector<2x1024xf32>
    %cst_3 = arith.constant 1.000000e+00 : f32
    %8 = vector.broadcast %cst_3 : f32 to vector<2x1024xf32>
    %9 = arith.addf %0, %8 : vector<2x1024xf32>
    %10 = arith.mulf %7, %9 : vector<2x1024xf32>
    %11 = arith.divf %5, %10 : vector<2x1024xf32>
    %c0_4 = arith.constant 0 : index
    %c0_5 = arith.constant 0 : index
    %12 = vector.load %arg2[%c0_4, %c0_5] : memref<2x1024xf32, #tpu.memory_space<vmem>>, vector<2x1024xf32>
    tpu.vector_store %arg2[%c0_4, %c0_5], %11 {strides = array<i32>} : memref<2x1024xf32, #tpu.memory_space<vmem>>, vector<2x1024xf32>,
    return
  }
  func.func @transform_0(%arg0: i32) -> (i32, i32) {
    %c0_i32 = arith.constant 0 : i32
    %c0_i32_0 = arith.constant 0 : i32
    return %arg0, %c0_i32 : i32, i32
  }
  func.func @transform_1(%arg0: i32) -> (i32, i32) {
    %c0_i32 = arith.constant 0 : i32
    %c0_i32_0 = arith.constant 0 : i32
    return %arg0, %c0_i32 : i32, i32
  }
}

</mosaic_0001>

<bundles_post_ra>
// kernel: pt_module_forward.1
= control target key start
LH: loop header
LB: loop body
LE: loop exit
PB: predicated region body
PF: predicated region fallthrough
CT: control target
= control target key end

     0   :  { %s58_s0 = inlined_call_operand.vmem [shape: f32[2,1024], index: 0, kind: input, shape index: {}]   ;;  %s59_s1 = inlined_call_operand.vmem [shape: f32[2,1024], index: 1, kind: output, shape index: {}]  }
   0x1   :  { %v8_v0 = vld [vmem:[%s58_s0] sm:$0xff]  ;;  %v9_v1 = vld [vmem:[%s58_s0 + $0x8] sm:$0xff] }
   0x2   :  { %v16_v2 = vadd.f32 1.0, %v8_v0  ;;  %v17_v3 = vadd.f32 1.0, %v9_v1  ;;  %v10_v6 = vadd.f32 2.0, %v8_v0  ;;  %v30_v7 = vadd.f32 -3.0, %v8_v0 }
   0x3   :  { %v11_v8 = vadd.f32 2.0, %v9_v1  ;;  %v31_v9 = vadd.f32 -3.0, %v9_v1 }
   0x4   :  { %v18_v4 = vmul.f32 %v16_v2, %v16_v2  ;;  %v19_v5 = vmul.f32 %v17_v3, %v17_v3  ;;  %v14_v10 = vmul.f32 %v30_v7, %v10_v6 }
   0x5   :  { %v15_v11 = vmul.f32 %v31_v9, %v11_v8 }
   0x6   :  { %32 = vrcp.f32 %v18_v4 }
   0x7   :  { %34 = vrcp.f32 %v19_v5 }
  0x13   :  { %v33_v12 = vpop.eup %32 }
  0x14   :  { %v35_v13 = vpop.eup %34  ;;  %v21_v14 = vmul.f32 %v33_v12, %v14_v10 }
  0x15   :  { %v23_v15 = vmul.f32 %v35_v13, %v15_v11 }
  0x16   :  { %24 = vst [vmem:[%s59_s1] sm:$0xff] %v21_v14 }
  0x17   :  { %25 = vst [vmem:[%s59_s1 + $0x8] sm:$0xff] %v23_v15 }

</bundles_post_ra>
